<compile_context>
chip_gen: v7x
topology: tpu7x:2x2x1
jax: 0.10.0
libtpu: 0.0.40
codegen_flags: <defaults>
</compile_context>

<pallas_src>
import jax
import jax.numpy as jnp
from jax import lax
from jax.experimental import pallas as pl
from jax.experimental.pallas import tpu as pltpu


def _linear_silu_kernel(x_ref, w_ref, b_ref, o_ref):
    x = x_ref[...]            # (B, IN)   f32
    w = w_ref[...]            # (OUT, IN) f32  -- PyTorch layout, no host transpose
    b = b_ref[...]            # (1, OUT)  f32

    # x @ w.T via dot_general contracting x dim 1 with w dim 1 (MXU-native).
    v1 = lax.dot_general(
        x, w,
        dimension_numbers=(((1,), (1,)), ((), ())),
        preferred_element_type=jnp.float32,
    ) + b                                           # (B, OUT)

    # SiLU epilogue in f32 on the VPU/EUP.
    o_ref[...] = (v1 * jax.nn.sigmoid(v1)).astype(o_ref.dtype)


@jax.jit
def linear_silu(x, weight, bias):
    """x: (B, IN) f32; weight: (OUT, IN) f32 (PyTorch convention); bias: (OUT,) f32."""
    B, IN = x.shape
    OUT = weight.shape[0]
    vmem = pl.BlockSpec(memory_space=pltpu.MemorySpace.VMEM)
    return pl.pallas_call(
        _linear_silu_kernel,
        out_shape=jax.ShapeDtypeStruct((B, OUT), x.dtype),
        in_specs=[vmem, vmem, vmem],
        out_specs=vmem,
    )(x, weight, bias.reshape(1, OUT))


if __name__ == "__main__":
    key = jax.random.PRNGKey(0)
    k_x, k_w, k_b = jax.random.split(key, 3)

    B, IN, OUT = 1, 64, 32
    x1 = jax.random.normal(k_x, (B, IN), dtype=jnp.float32)
    # Deterministic "Linear" parameters (uniform like PyTorch's default range).
    bound = 1.0 / (IN ** 0.5)
    weight = jax.random.uniform(k_w, (OUT, IN), minval=-bound, maxval=bound,
                                dtype=jnp.float32)
    bias = jax.random.uniform(k_b, (OUT,), minval=-bound, maxval=bound,
                              dtype=jnp.float32)

    out = linear_silu(x1, weight, bias)
    out = jax.block_until_ready(out)

    # Reference check in plain JAX (f32 path -> tight tolerance).
    v1 = x1 @ weight.T + bias
    ref = v1 * jax.nn.sigmoid(v1)
    assert out.shape == (B, OUT)
    assert jnp.allclose(out, ref, atol=1e-5, rtol=1e-5)

    print("KERNEL_OK")
</pallas_src>

<mosaic_0001>
module attributes {stable_mosaic.version = 11 : i64} {
  func.func @_linear_silu_kernel(%arg0: memref<1x64xf32, #tpu.memory_space<vmem>>, %arg1: memref<32x64xf32, #tpu.memory_space<vmem>>, %arg2: memref<1x32xf32, #tpu.memory_space<vmem>>, %arg3: memref<1x32xf32, #tpu.memory_space<vmem>>) attributes {dimension_semantics = [], scalar_prefetch = 0 : i64, scratch_operands = 0 : i64, tpu.core_type = #tpu.core_type<tc>} {
    %c0 = arith.constant 0 : index
    %c0_0 = arith.constant 0 : index
    %0 = vector.load %arg0[%c0, %c0_0] : memref<1x64xf32, #tpu.memory_space<vmem>>, vector<1x64xf32>
    %c0_1 = arith.constant 0 : index
    %c0_2 = arith.constant 0 : index
    %1 = vector.load %arg1[%c0_1, %c0_2] : memref<32x64xf32, #tpu.memory_space<vmem>>, vector<32x64xf32>
    %c0_3 = arith.constant 0 : index
    %c0_4 = arith.constant 0 : index
    %2 = vector.load %arg2[%c0_3, %c0_4] : memref<1x32xf32, #tpu.memory_space<vmem>>, vector<1x32xf32>
    %cst = arith.constant dense<0.000000e+00> : vector<1x32xf32>
    %3 = tpu.matmul %0, %1, %cst {dimension_numbers = #tpu.dot_dimension_numbers<[1], [1], [0], [0], [0, 0, 1, 0], [], []>} : vector<1x64xf32>, vector<32x64xf32>, vector<1x32xf32> -> vector<1x32xf32>
    %4 = arith.addf %3, %2 : vector<1x32xf32>
    %5 = arith.negf %4 : vector<1x32xf32>
    %6 = math.exp %5 : vector<1x32xf32>
    %cst_5 = arith.constant 1.000000e+00 : f32
    %7 = vector.broadcast %cst_5 : f32 to vector<1x32xf32>
    %8 = arith.addf %7, %6 : vector<1x32xf32>
    %9 = arith.divf %7, %8 : vector<1x32xf32>
    %10 = arith.mulf %4, %9 : vector<1x32xf32>
    %c0_6 = arith.constant 0 : index
    %c0_7 = arith.constant 0 : index
    %11 = vector.load %arg3[%c0_6, %c0_7] : memref<1x32xf32, #tpu.memory_space<vmem>>, vector<1x32xf32>
    tpu.vector_store %arg3[%c0_6, %c0_7], %10 {strides = array<i32>} : memref<1x32xf32, #tpu.memory_space<vmem>>, vector<1x32xf32>,
    return
  }
}

</mosaic_0001>

<bundles_post_ra>
// kernel: linear_silu.1
= control target key start
LH: loop header
LB: loop body
LE: loop exit
PB: predicated region body
PF: predicated region fallthrough
CT: control target
= control target key end

     0   :  { %8 = vsyncpa [#allocation3], 0  ;;  %s291_s0 = inlined_call_operand.vmem [shape: f32[1,64], index: 0, kind: input, shape index: {}]   ;;  %s292_s1 = inlined_call_operand.hbm [shape: f32[32,64], index: 1, kind: input, shape index: {}]   ;;  %s293_s2 = inlined_call_operand.vmem [shape: f32[1,32], index: 2, kind: input, shape index: {}]   ;;  %s294_s3 = inlined_call_operand.hbm [shape: f32[1,32], index: 3, kind: output, shape index: {}]  }
   0x1   :  { %9 = vsyncpa [#allocation4], 0  ;;  %s234_s12 = smov [#allocation2]   ;;  %s186_s16 = scalar_lea.hbm %s292_s1, 512 }
   0x2   :  { %s17_s13 = sshll.u32 %s234_s12, 4  ;;  %p187_p0 = scmp.ne.s32.totalorder %s292_s1, %s186_s16  ;;  %s18_s13 = int_to_ptr.vmem [resolvable:$true] %s17_s13 }
   0x3   :  { %p190_p1 = scmp.lt.u32.totalorder %s186_s16, %s292_s1 }
   0x5   :  { %p192_p2 = pnand %p190_p1, %p187_p0 }
   0x7   :  { %195 = shalt.err (!%p192_p2)
}
   0x8   :  { %s196_s21 = scalar_lea.vmem %s18_s13, 512  ;;  %p201_p4 = scmp.lt.s32.totalorder %s18_s13, %s18_s13 }
   0x9   :  { %p197_p3 = scmp.ne.s32.totalorder %s18_s13, %s196_s21  ;;  %p202_p5 = scmp.lt.s32.totalorder %s196_s21, %s196_s21 }
   0xb   :  { %p203_p6 = por %p202_p5, %p201_p4 }
   0xd   :  { %p204_p7 = pnand %p203_p6, %p197_p3 }
   0xf   :  { %207 = shalt.err (!%p204_p7)
}
  0x10   :  { %s235_s22 = smov 128   ;;  %s236_s23 = smov 8  }
  0x11   :  { %23 = dma.hbm_to_vmem [thread:$0]  %s292_s1, 512, %s18_s13, [#allocation3], %s235_s22, %s235_s22, %s236_s23  }
  0x12   :  { %230 = dma.done.wait [#allocation3], 512  }
  0x13   :  { %231 = vsyncadd [#allocation3], 4294966784  ;;  %v237_v0 = vmov 0.0|0.0   ;;  %vm238_vm0 = vmmov 0   ;;  %v239_v1 = vmov 0.0   ;;  %vm35_vm1 = vcmask 523264  }
  0x14   :  { %167 = vmatprep.subr.bf16.mxu0 %v237_v0  ;;  %164 = vmatprep.mubr.msk.f32.mxu0 %vm238_vm0, %v239_v1  ;;  %v30_v2 = vld [vmem:[#allocation2] sm:$0xff]  ;;  %v31_v3 = vld [vmem:[#allocation2 + $0x8] sm:$0xff]  ;;  %vm169_vm2 = vmpackc.low %vm35_vm1, %vm35_vm1  ;;  %s240_s29 = smov [#allocation5]   ;;  %vm128_vm3 = vcmask 253952  }
  0x15   :  { %v168_v4 = vpack.c.bf16 %v31_v3, %v30_v2  ;;  %v32_v5 = vld [vmem:[#allocation2 + $0x10] sm:$0xff]  ;;  %v33_v6 = vld [vmem:[#allocation2 + $0x18] sm:$0xff]  ;;  %v29_v8 = vld [vmem:[%s291_s0] sm:$0x1]  ;;  %s136_s30 = sshll.u32 %s240_s29, 4  ;;  %s137_s30 = int_to_ptr.vmem [resolvable:$true] %s136_s30 }
  0x16   :  { %v172_v7 = vpack.c.bf16 %v33_v6, %v32_v5  ;;  %v34_v9 = vld [vmem:[%s293_s2] sm:$0x1]  ;;  %s208_s0 = scalar_lea.vmem %s137_s30, 16  ;;  %s212_s4 = scalar_lea.vmem %s137_s30, 32 }
  0x17   :  { %170 = vmatpush3.bf16.xpose.msk.msra.mxu0 %vm169_vm2, %v168_v4  ;;  %p209_p8 = scmp.ne.s32.totalorder %s137_s30, %s208_s0  ;;  %p213_p9 = scmp.lt.s32.totalorder %s137_s30, %s137_s30 }
  0x18   :  { %171 = vmatprep.subr.bf16.mxu0 %v237_v0  ;;  %p214_p10 = scmp.lt.s32.totalorder %s212_s4, %s208_s0 }
  0x1a   :  { %p215_p11 = por %p214_p10, %p213_p9 }
  0x1c   :  { %p216_p12 = pnand %p215_p11, %p209_p8 }
  0x1f   :  { %174 = vmatpush3.bf16.xpose.msk.msra.mxu0 %vm169_vm2, %v172_v7 }
  0x26   :  { %165 = vmatmul.mubr.msk.f32.vlgmr.msra.gmra.mrb[0].mxu0 %vm35_vm1, %v29_v8 }
  0xf9   :  { %v117_v10 = vpop.f32.mrb[0].mxu0 }
  0xfa   :  { %v118_v11 = vadd.f32 %v117_v10, %v34_v9  ;;  %v166_v12 = vpop.f32.mrb[1].mxu0 }
  0xfc   :  { %v150_v13 = vmul.f32 -1.442695, %v118_v11 }
  0xfe   :  { %182 = vpow2.f32 %v150_v13 }
 0x108   :  { %v183_v14 = vpop.eup %182 }
 0x109   :  { %v124_v15 = vadd.f32 1.0, %v183_v14 }
 0x10b   :  { %184 = vrcp.f32 %v124_v15 }
 0x115   :  { %v185_v16 = vpop.eup %184 }
 0x116   :  { %v127_v17 = vmul.f32 %v185_v16, %v118_v11 }
 0x118   :  { %129 = vst.msk [vmem:[#allocation5] sm:$0x1] %vm128_vm3, %v127_v17 }
 0x119   :  { %219 = shalt.err (!%p216_p12)
}
 0x11a   :  { %s220_s6 = scalar_lea.hbm %s294_s3, 16 }
 0x11b   :  { %p221_p13 = scmp.ne.s32.totalorder %s294_s3, %s220_s6  ;;  %p224_p0 = scmp.lt.u32.totalorder %s220_s6, %s294_s3 }
 0x11d   :  { %p226_p1 = pnand %p224_p0, %p221_p13 }
 0x11f   :  { %229 = shalt.err (!%p226_p1)
}
 0x120   :  { %139 = dma.vmem_to_hbm [thread:$0]  %s137_s30, 16, %s294_s3, [#allocation4]  }
 0x121   :  { %232 = dma.done.wait [#allocation4], 16  }
 0x122   :  { %233 = vsyncadd [#allocation4], 4294967280 }
 0x123   :  { %143 = vsyncpa [#allocation3], 1 }
 0x124   :  { %144 = vsyncpa [#allocation4], 1 }

</bundles_post_ra>
